<compile_context>
chip_gen: v5e
topology: v5e:2x2
jax: 0.10.0
libtpu: 0.0.40
codegen_flags: <defaults>
</compile_context>

<pallas_src>
import math

import jax
import jax.numpy as jnp
from jax import lax
from jax.experimental import pallas as pl
from jax.experimental.pallas import tpu as pltpu


def _round_up(x, m):
    return ((x + m - 1) // m) * m


def _hw_profile():
    """Best-effort hardware query; safe fallbacks if unavailable."""
    kind = ""
    try:
        kind = jax.devices()[0].device_kind.lower()
    except Exception:
        pass
    vmem_cap = None
    try:
        vmem_cap = int(pltpu.get_tpu_info().vmem_capacity_bytes)
    except Exception:
        pass
    if vmem_cap is None:
        vmem_cap = (64 << 20) if ("v7" in kind or "7x" in kind) else (128 << 20)
    return kind, vmem_cap


def _default_tiles(kind, vmem_cap, bytes_per_el):
    """Generation-aware (tm, tn, tk) defaults (clamped to the problem later)."""
    if "v5" in kind and ("lite" in kind or "v5e" in kind):
        # v5e: 4x128^2 MXU, ~240 FLOP/byte breakeven -> modest tiles suffice.
        return 512, 512, 1024
    if "v7" in kind or vmem_cap <= (64 << 20):
        # v7x: 64 MiB VMEM/TC, ~310 FLOP/byte breakeven.
        return 512, 1024, 1024
    # v6e-class (128 MiB VMEM): big tiles to feed the 2x256^2 MXUs.
    if bytes_per_el <= 2:
        return 1024, 2048, 1024
    return 1024, 1024, 1024


def _make_kernel(fuse_bias):
    """Tiled matmul with optional fused bias add.

    x_ref : (tm, tk)  tile of X  [(S*B), H]
    w_ref : (tn, tk)  tile of W  [O, H]   (untransposed; NT contraction on MXU)
    b_ref : (1,  tn)  f32 bias tile (only when fuse_bias)
    o_ref : (tm, tn)  output tile
    acc_ref: (tm, tn) f32 accumulator scratch (lives across the K grid axis)
    """

    def kernel(*refs):
        if fuse_bias:
            x_ref, w_ref, b_ref, o_ref, acc_ref = refs
        else:
            x_ref, w_ref, o_ref, acc_ref = refs

        k = pl.program_id(2)
        last = pl.num_programs(2) - 1

        @pl.when(k == 0)
        def _():
            if fuse_bias:
                # Seed the accumulator with the broadcast bias (saves a
                # separate add + f32 read in the epilogue).
                acc_ref[...] = jnp.broadcast_to(b_ref[...], acc_ref.shape)
            else:
                acc_ref[...] = jnp.zeros_like(acc_ref)

        # X @ W.T without materializing W.T: contract the last dim of both
        # tiles (same NT form the MXU runs for q @ k^T in flash attention).
        prod = lax.dot_general(
            x_ref[...],
            w_ref[...],
            dimension_numbers=(((1,), (1,)), ((), ())),
            preferred_element_type=jnp.float32,
        )

        @pl.when(k != last)
        def _():
            acc_ref[...] += prod

        @pl.when(k == last)
        def _():
            # Write directly from acc + fresh partial product.
            o_ref[...] = (acc_ref[...] + prod).astype(o_ref.dtype)

    return kernel


def column_parallel_linear(x, weight, bias=None, *, skip_bias_add=False,
                           tm=None, tn=None, tk=None):
    """Forward of ColumnParallelLinear (world_size=1, gather_output=True).

    Args:
      x:      [S, B, H]
      weight: [O, H]
      bias:   [O] or None
    Returns:
      (output [S, B, O], output_bias)  where output_bias follows the module:
      bias if skip_bias_add else None.
    """
    S, B, H = x.shape
    O, H2 = weight.shape
    assert H == H2, "hidden dim mismatch between input and weight"
    M = S * B

    # Compute dtype follows standard promotion (same dtype in normal usage).
    dtype = jnp.result_type(x.dtype, weight.dtype)
    bytes_per_el = jnp.dtype(dtype).itemsize
    sub = 16 if bytes_per_el == 2 else 8  # sublane multiple (bf16 packs 2/row)

    kind, vmem_cap = _hw_profile()
    dtm, dtn, dtk = _default_tiles(kind, vmem_cap, bytes_per_el)
    tm = dtm if tm is None else tm
    tn = dtn if tn is None else tn
    tk = dtk if tk is None else tk

    fuse_bias = (bias is not None) and (not skip_bias_add)

    # Clamp tiles to the (sublane/lane-rounded) problem; keep HW alignment.
    tm = _round_up(max(sub, min(tm, _round_up(M, sub))), sub)
    tn = _round_up(max(128, min(tn, _round_up(O, 128))), 128)

    # The contraction dim must be zero-padded exactly for correctness.
    # Pick the largest multiple-of-128 tk (<= requested) dividing the
    # 128-rounded H, so K-padding is at most 127 columns.
    Hp = _round_up(H, 128)
    tk = _round_up(max(128, min(tk, Hp)), 128)
    tk = max(t for t in range(128, tk + 1, 128) if Hp % t == 0)

    # Megacore (e.g. 2 TensorCores on v7x): keep >= 2 parallel output blocks
    # whenever possible by splitting the M axis further.
    while pl.cdiv(M, tm) * pl.cdiv(O, tn) < 2 and tm > sub:
        tm = _round_up(max(sub, tm // 2), sub)

    grid = (pl.cdiv(M, tm), pl.cdiv(O, tn), Hp // tk)

    x2d = x.reshape(M, H).astype(dtype)
    w = weight.astype(dtype)
    if Hp != H:
        # Only H (the contraction dim) needs zero padding. Partial M/O blocks
        # are handled by Pallas: OOB rows/cols of X/W only affect output
        # rows/cols beyond (M, O), and those stores are dropped.
        x2d = jnp.pad(x2d, ((0, 0), (0, Hp - H)))
        w = jnp.pad(w, ((0, 0), (0, Hp - H)))

    # NOTE: if a bundle dump ever shows per-tile vxpose for the NT contraction,
    # switch the weight layout to [H, O] once outside the hot path and contract
    # (((1,),(0,))).  If exposed DMA waits remain on the W stream after tile
    # enlargement, add pipeline_mode=pl.Buffered(3) to the W BlockSpec.
    in_specs = [
        pl.BlockSpec((tm, tk), lambda i, j, k: (i, k)),   # X tile
        pl.BlockSpec((tn, tk), lambda i, j, k: (j, k)),   # W tile (no .T)
    ]
    operands = [x2d, w]
    if fuse_bias:
        in_specs.append(pl.BlockSpec((1, tn), lambda i, j, k: (0, j)))
        operands.append(bias.astype(jnp.float32).reshape(1, O))

    # Per-step VMEM footprint: double-buffered X/W/out tiles + f32 acc (+bias).
    tile_bytes = (2 * (tm * tk + tn * tk + tm * tn) * bytes_per_el
                  + tm * tn * 4 + 2 * tn * 4)
    cap = (100 << 20) if vmem_cap > (64 << 20) else (56 << 20)
    vmem_limit = int(min(min(cap, vmem_cap), max(32 << 20, 2 * tile_bytes)))

    cost = pl.CostEstimate(
        flops=2 * M * O * Hp,
        transcendentals=0,
        bytes_accessed=((M * Hp + O * Hp + M * O) * bytes_per_el
                        + (O * 4 if fuse_bias else 0)),
    )

    out2d = pl.pallas_call(
        _make_kernel(fuse_bias),
        out_shape=jax.ShapeDtypeStruct((M, O), dtype),
        grid_spec=pltpu.PrefetchScalarGridSpec(
            num_scalar_prefetch=0,
            grid=grid,
            in_specs=in_specs,
            out_specs=pl.BlockSpec((tm, tn), lambda i, j, k: (i, j)),
            scratch_shapes=[pltpu.VMEM((tm, tn), jnp.float32)],
        ),
        compiler_params=pltpu.CompilerParams(
            dimension_semantics=("parallel", "parallel", "arbitrary"),
            vmem_limit_bytes=vmem_limit,
        ),
        cost_estimate=cost,
    )(*operands)

    output = out2d.reshape(S, B, O)
    output_bias = bias if skip_bias_add else None
    return output, output_bias


def init_column_parallel_linear_params(key, input_size, output_size,
                                       dtype=jnp.float32):
    """Parameter init matching the module's __init__ (world_size = 1):
    weight [output_size, input_size] via xavier_normal_, bias zeros."""
    std = math.sqrt(2.0 / (input_size + output_size))  # xavier_normal_, gain=1
    weight = std * jax.random.normal(key, (output_size, input_size),
                                     dtype=jnp.float32)
    bias = jnp.zeros((output_size,), dtype=jnp.float32)
    return weight.astype(dtype), bias.astype(dtype)


# TODO(synk): tensor-parallel collectives (copy_to/gather_from region, async
# grad allreduce, sequence parallel) are identity at world_size=1 and are not
# implemented here; backward/grad-accumulation fusion is training-only.

if __name__ == "__main__":
    # input_ is [sequence, batch, hidden] (Megatron convention).
    seq, batch, hidden, output_size = 8, 4, 256, 512

    key = jax.random.PRNGKey(0)
    kx, kw = jax.random.split(key)
    x = jax.random.normal(kx, (seq, batch, hidden), dtype=jnp.float32)
    weight, bias = init_column_parallel_linear_params(kw, hidden, output_size)

    out, out_bias = column_parallel_linear(x, weight, bias)
    out = jax.block_until_ready(out)

    ref = (x.reshape(-1, hidden) @ weight.T + bias).reshape(seq, batch,
                                                            output_size)
    assert out.shape == (seq, batch, output_size)
    assert jnp.allclose(out, ref, atol=1e-4, rtol=1e-4), "mismatch vs reference"
    assert out_bias is None

    # Non-divisible shapes exercise the partial-block / K-padding path.
    seq2, batch2, hidden2, out_sz2 = 5, 3, 200, 300
    k2x, k2w = jax.random.split(jax.random.PRNGKey(1))
    x2 = jax.random.normal(k2x, (seq2, batch2, hidden2), dtype=jnp.float32)
    w2, b2 = init_column_parallel_linear_params(k2w, hidden2, out_sz2)
    y2, _ = column_parallel_linear(x2, w2, b2)
    y2 = jax.block_until_ready(y2)
    ref2 = (x2.reshape(-1, hidden2) @ w2.T + b2).reshape(seq2, batch2, out_sz2)
    assert jnp.allclose(y2, ref2, atol=1e-4, rtol=1e-4), "padded-path mismatch"

    # bf16 path (high-throughput MXU dtype) with skip_bias_add=True.
    seq3, batch3, hidden3, out_sz3 = 4, 2, 128, 256
    k3x, k3w = jax.random.split(jax.random.PRNGKey(2))
    x3 = jax.random.normal(k3x, (seq3, batch3, hidden3),
                           dtype=jnp.float32).astype(jnp.bfloat16)
    w3, b3 = init_column_parallel_linear_params(k3w, hidden3, out_sz3,
                                                dtype=jnp.bfloat16)
    y3, ob3 = column_parallel_linear(x3, w3, b3, skip_bias_add=True)
    y3 = jax.block_until_ready(y3)
    ref3 = (x3.reshape(-1, hidden3).astype(jnp.float32)
            @ w3.T.astype(jnp.float32)).reshape(seq3, batch3, out_sz3)
    assert y3.dtype == jnp.bfloat16
    assert jnp.allclose(y3.astype(jnp.float32), ref3, atol=2e-2, rtol=2e-2), \
        "bf16-path mismatch"
    assert ob3 is not None and ob3.shape == (out_sz3,)

    print("KERNEL_OK")
</pallas_src>

<mosaic_0001>
module attributes {stable_mosaic.version = 11 : i64} {
  func.func @kernel(%arg0: i32, %arg1: i32, %arg2: i32, %arg3: memref<16x256xf32, #tpu.memory_space<vmem>>, %arg4: memref<512x256xf32, #tpu.memory_space<vmem>>, %arg5: memref<1x512xf32, #tpu.memory_space<vmem>>, %arg6: memref<16x512xf32, #tpu.memory_space<vmem>>, %arg7: memref<16x512xf32, #tpu.memory_space<vmem>>) attributes {dimension_semantics = [#tpu.dimension_semantics<parallel>, #tpu.dimension_semantics<parallel>, #tpu.dimension_semantics<arbitrary>], iteration_bounds = array<i64: 2, 1, 1>, scalar_prefetch = 0 : i64, scratch_operands = 1 : i64, tpu.core_type = #tpu.core_type<tc>, window_params = [{transform_indices = @transform_0, window_bounds = array<i64: 16, 256>}, {transform_indices = @transform_1, window_bounds = array<i64: 512, 256>}, {transform_indices = @transform_2, window_bounds = array<i64: 1, 512>}, {transform_indices = @transform_3, window_bounds = array<i64: 16, 512>}]} {
    %c0_i32 = arith.constant 0 : i32
    %0 = arith.cmpi eq, %arg2, %c0_i32 : i32
    %1 = arith.extui %0 : i1 to i32
    %c0_i32_0 = arith.constant 0 : i32
    %2 = arith.cmpi ne, %1, %c0_i32_0 : i32
    scf.if %2 {
      %c0_8 = arith.constant 0 : index
      %c0_9 = arith.constant 0 : index
      %12 = vector.load %arg5[%c0_8, %c0_9] : memref<1x512xf32, #tpu.memory_space<vmem>>, vector<1x512xf32>
      %13 = vector.shape_cast %12 : vector<1x512xf32> to vector<1x512xf32>
      %14 = vector.broadcast %13 : vector<1x512xf32> to vector<16x512xf32>
      %c0_10 = arith.constant 0 : index
      %c0_11 = arith.constant 0 : index
      %15 = vector.load %arg7[%c0_10, %c0_11] : memref<16x512xf32, #tpu.memory_space<vmem>>, vector<16x512xf32>
      tpu.vector_store %arg7[%c0_10, %c0_11], %14 {strides = array<i32>} : memref<16x512xf32, #tpu.memory_space<vmem>>, vector<16x512xf32>,
    } else {
    }
    %c0 = arith.constant 0 : index
    %c0_1 = arith.constant 0 : index
    %3 = vector.load %arg3[%c0, %c0_1] : memref<16x256xf32, #tpu.memory_space<vmem>>, vector<16x256xf32>
    %c0_2 = arith.constant 0 : index
    %c0_3 = arith.constant 0 : index
    %4 = vector.load %arg4[%c0_2, %c0_3] : memref<512x256xf32, #tpu.memory_space<vmem>>, vector<512x256xf32>
    %cst = arith.constant dense<0.000000e+00> : vector<16x512xf32>
    %5 = tpu.matmul %3, %4, %cst {dimension_numbers = #tpu.dot_dimension_numbers<[1], [1], [0], [0], [0, 0, 1, 0], [], []>} : vector<16x256xf32>, vector<512x256xf32>, vector<16x512xf32> -> vector<16x512xf32>
    %c0_i32_4 = arith.constant 0 : i32
    %6 = arith.cmpi ne, %arg2, %c0_i32_4 : i32
    %7 = arith.extui %6 : i1 to i32
    %c0_i32_5 = arith.constant 0 : i32
    %8 = arith.cmpi ne, %7, %c0_i32_5 : i32
    scf.if %8 {
      %c0_8 = arith.constant 0 : index
      %c0_9 = arith.constant 0 : index
      %12 = vector.load %arg7[%c0_8, %c0_9] : memref<16x512xf32, #tpu.memory_space<vmem>>, vector<16x512xf32>
      %13 = arith.addf %12, %5 : vector<16x512xf32>
      %c0_10 = arith.constant 0 : index
      %c0_11 = arith.constant 0 : index
      %14 = vector.load %arg7[%c0_10, %c0_11] : memref<16x512xf32, #tpu.memory_space<vmem>>, vector<16x512xf32>
      tpu.vector_store %arg7[%c0_10, %c0_11], %13 {strides = array<i32>} : memref<16x512xf32, #tpu.memory_space<vmem>>, vector<16x512xf32>,
    } else {
    }
    %c0_i32_6 = arith.constant 0 : i32
    %9 = arith.cmpi eq, %arg2, %c0_i32_6 : i32
    %10 = arith.extui %9 : i1 to i32
    %c0_i32_7 = arith.constant 0 : i32
    %11 = arith.cmpi ne, %10, %c0_i32_7 : i32
    scf.if %11 {
      %c0_8 = arith.constant 0 : index
      %c0_9 = arith.constant 0 : index
      %12 = vector.load %arg7[%c0_8, %c0_9] : memref<16x512xf32, #tpu.memory_space<vmem>>, vector<16x512xf32>
      %13 = arith.addf %12, %5 : vector<16x512xf32>
      %c0_10 = arith.constant 0 : index
      %c0_11 = arith.constant 0 : index
      %14 = vector.load %arg6[%c0_10, %c0_11] : memref<16x512xf32, #tpu.memory_space<vmem>>, vector<16x512xf32>
      tpu.vector_store %arg6[%c0_10, %c0_11], %13 {strides = array<i32>} : memref<16x512xf32, #tpu.memory_space<vmem>>, vector<16x512xf32>,
    } else {
    }
    return
  }
  func.func @transform_0(%arg0: i32, %arg1: i32, %arg2: i32) -> (i32, i32) {
    %c0_i32 = arith.constant 0 : i32
    return %arg0, %arg2 : i32, i32
  }
  func.func @transform_1(%arg0: i32, %arg1: i32, %arg2: i32) -> (i32, i32) {
    %c0_i32 = arith.constant 0 : i32
    return %arg1, %arg2 : i32, i32
  }
  func.func @transform_2(%arg0: i32, %arg1: i32, %arg2: i32) -> (i32, i32) {
    %c0_i32 = arith.constant 0 : i32
    %c0_i32_0 = arith.constant 0 : i32
    return %c0_i32, %arg1 : i32, i32
  }
  func.func @transform_3(%arg0: i32, %arg1: i32, %arg2: i32) -> (i32, i32) {
    %c0_i32 = arith.constant 0 : i32
    return %arg0, %arg1 : i32, i32
  }
}

</mosaic_0001>

<bundles_post_ra>
// kernel: tpu_custom_call.1
= control target key start
LH: loop header
LB: loop body
LE: loop exit
PB: predicated region body
PF: predicated region fallthrough
CT: control target
= control target key end

     0   :  { %8 = vsyncpa [#allocation4], 0  ;;  %s1309_s0 = inlined_call_operand.hbm [shape: f32[32,256], index: 0, kind: input, shape index: {}]   ;;  %s1310_s1 = inlined_call_operand.hbm [shape: f32[512,256], index: 1, kind: input, shape index: {}]   ;;  %s1311_s2 = inlined_call_operand.hbm [shape: f32[1,512], index: 2, kind: input, shape index: {}]   ;;  %s1312_s3 = inlined_call_operand.hbm [shape: f32[32,512], index: 3, kind: output, shape index: {}]  }
   0x1   :  { %10 = vsyncpa [#allocation4 + $0x1], 0 }
   0x2   :  { %11 = vsyncpa [#allocation7], 0 }
   0x3   :  { %12 = vsyncpa [#allocation5], 0 }
   0x4   :  { %14 = vsyncpa [#allocation5 + $0x1], 0  ;;  %s1119_s12 = smov 0   ;;  %s1121_s13 = smov 0  }
   0x5   :  { %s1123_s14 = smov 0   ;;  %s1125_s15 = smov 0  }
   0x6   :  { %s1127_s16 = smov 0   ;;  %s1129_s17 = smov 0  }
   0x7 LB: > { %s803_s18 = sadd.s32 4294967295, %s1091_s17   ;;  %s804_s19 = sadd.s32 4294967294, %s1091_s17   ;;  %s1091_s17 = sphi %s1129_s17, %s20_s17   ;;  %s1087_s16 = sphi %s1127_s16, %s1322_s16   ;;  %s1083_s15 = sphi %s1125_s15, %s1321_s15   ;;  %s1079_s14 = sphi %s1123_s14, %s1320_s14   ;;  %s1075_s13 = sphi %s1121_s13, %s1319_s13   ;;  %s1071_s12 = sphi %s1119_s12, %s1318_s12  }
   0x8   : > { %p61_p0 = scmp.ne.s32.totalorder %s1075_s13, %s1071_s12  ;;  %p1153_p1 = scmp.eq.s32.totalorder %s803_s18, 0 }
   0x9   : > { %p147_p2 = scmp.eq.s32.totalorder %s804_s19, 1  ;;  %p805_p4 = scmp.ge.s32.totalorder %s1091_s17, 1 }
   0xa   : > { %p1159_p3 = por %p1153_p1, %p61_p0  ;;  %p154_p6 = scmp.lt.s32.totalorder %s1091_s17, 3 }
   0xb   : > { %p1164_p5 = por %p147_p2, %p61_p0  ;;  %s171_s25 = sshll.u32 %s1310_s1, 4  ;;  %s172_s25 = int_to_ptr.hbm [resolvable:$true] %s171_s25 }
   0xc   : > { %p1172_p7 = pnand %p805_p4, %p154_p6  ;;  %s1093_s27 = smov [#allocation6]  }
   0xd   : > { %s173_s28 = sshll.u32 %s1093_s27, 4  ;;  %p808_p10 = scmp.ge.s32.totalorder %s1091_s17, 2  ;;  %s174_s28 = int_to_ptr.vmem [resolvable:$true] %s173_s28 }
   0xe   : > { %p840_p8 = pneg %p1172_p7  ;;  %s188_s4 = sshll.u32 %s1311_s2, 4  ;;  %s189_s4 = int_to_ptr.hbm [resolvable:$true] %s188_s4 }
   0xf   : > { %s1094_s5 = smov 256   ;;  %s1095_s6 = smov 16  }
  0x10   : > { %p841_p9 = pnand %p840_p8, %p1153_p1  ;;  %s1096_s7 = smov [#allocation8]  }
  0x11   : > { %s190_s8 = sshll.u32 %s1096_s7, 4  ;;  %p141_p11 = scmp.eq.s32.totalorder %s803_s18, 1  ;;  %s191_s8 = int_to_ptr.vmem [resolvable:$true] %s190_s8 }
  0x12   : > { %843 = dma.hbm_to_vmem [thread:$0]  (!%p841_p9), %s172_s25, 16384, %s174_s28, [#allocation7], %s1094_s5, %s1094_s5, %s1095_s6  }
  0x13   : > { %846 = dma.hbm_to_vmem [thread:$0]  (!%p841_p9), %s189_s4, 64, %s191_s8, [#allocation7]  }
  0x14   : > { %s39_s9 = sadd.s32 1, %s1087_s16  ;;  %s48_s10 = sadd.s32 1, %s1079_s14 }
  0x15   : > { %p41_p12 = scmp.ge.s32.totalorder %s39_s9, 2  ;;  %p55_p13 = scmp.ne.s32.totalorder %s1079_s14, %s1075_s13 }
  0x16   : > { %p56_p0 = scmp.eq.s32.totalorder %s1091_s17, 0  ;;  %p857_p4 = scmp.lt.s32.totalorder %s1091_s17, 2 }
  0x17   : > { %s1324_s9 = smov (%p41_p12, %s39_s9), 0  ;;  %p1194_p2 = por %p141_p11, %p55_p13 }
  0x18   : > { %s43_s19 = ssub.s32 %s1087_s16, %s1324_s9  ;;  %s201_s23 = sand.u32 1, %s1079_s14  }
  0x19   : > { %p46_p6 = scmp.eq.s32.totalorder %s43_s19, 0  ;;  %p57_p8 = por %p56_p0, %p55_p13 }
  0x1a   : > { %s809_s24 = sshll.u32 %s201_s23, 5  ;;  %s825_s18 = sshll.u32 %s1087_s16, 5 }
  0x1b   : > { %s1204_s25 = scalar_select %p46_p6, %s1079_s14, %s48_s10  }
  0x1c   : > { %s213_s29 = scalar_lea.hbm %s1309_s0, %s825_s18  ;;  %s205_s4 = scalar_lea.vmem [#allocation3], %s809_s24 }
  0x1d   : > { %s214_s30 = sshll.u32 %s213_s29, 4  ;;  %s216_s7 = sshll.u32 %s205_s4, 4  ;;  %s215_s30 = int_to_ptr.hbm [resolvable:$true] %s214_s30  ;;  %s217_s7 = int_to_ptr.vmem [resolvable:$true] %s216_s7 }
  0x1e   : > { %p848_p9 = pnand %p857_p4, %p57_p8  ;;  %s202_s8 = scalar_lea.sflag [#allocation4], %s201_s23 }
  0x1f   : > { %228 = sbr.rel (%p1172_p7) target bundleno = 315 (0x13b), region = 32  ;;  %s1217_s10 = sand.u32 (!%p1172_p7), 1, %s1075_s13  }
  0x20   : > { %850 = dma.hbm_to_vmem [thread:$0]  (!%p848_p9), %s215_s30, 512, %s217_s7, %s202_s8, %s1094_s5, %s1094_s5, %s1095_s6  }
  0x21   : > { %s814_s19 = sshll.u32 (!%p1172_p7), %s1217_s10, 5  ;;  %s231_s24 = scalar_lea.sflag (!%p1172_p7), [#allocation4], %s1217_s10 }
  0x22   : > { %s1221_s18 = scalar_lea.vmem (!%p1172_p7), [#allocation3], %s814_s19 }
  0x24   : > { %1058 = dma.done.wait (%p1159_p3), %s231_s24, 512  }
  0x25   : > { %1060 = vsyncadd (%p1159_p3), %s231_s24, 4294966784 }
  0x26   : > { %1062 = dma.done.wait (%p1153_p1), [#allocation7], 16448  }
  0x27   : > { %1064 = vsyncadd (%p1153_p1), [#allocation7], 4294950848  ;;  %v363_v0 = vld [vmem:[#allocation6 + $0x1f0] sm:$0xff]  ;;  %v364_v1 = vld [vmem:[#allocation6 + $0x1f8] sm:$0xff]  ;;  %s817_s20 = sshll.u32 %s1217_s10, 6  ;;  %s827_s26 = sshll.u32 %s1083_s15, 6 }
  0x28   : > { %475 = vmatpush.xpose.msra.mxu2 %v363_v0  ;;  %498 = vmatpush.xpose.msra.mxu3 %v364_v1  ;;  %v331_v2 = vld [vmem:[#allocation6 + $0xf0] sm:$0xff]  ;;  %v332_v3 = vld [vmem:[#allocation6 + $0xf8] sm:$0xff]  ;;  %v361_v4 = vld [vmem:[#allocation6 + $0x1e0] sm:$0xff]  ;;  %s1260_s21 = scalar_lea.vmem [#allocation9], %s817_s20  ;;  %s683_s23 = scalar_lea.hbm %s1312_s3, %s827_s26 }
  0x29   : > { %v362_v5 = vld [vmem:[#allocation6 + $0x1e8] sm:$0xff]  ;;  %429 = vmatpush.xpose.msra.mxu0 %v331_v2  ;;  %452 = vmatpush.xpose.msra.mxu1 %v332_v3  ;;  %v329_v6 = vld [vmem:[#allocation6 + $0xe0] sm:$0xff]  ;;  %v359_v8 = vld [vmem:[#allocation6 + $0x1d0] sm:$0xff]  ;;  %s684_s27 = sshll.u32 %s1260_s21, 4  ;;  %s686_s28 = sshll.u32 %s683_s23, 4  ;;  %s685_s27 = int_to_ptr.vmem [resolvable:$true] %s684_s27  ;;  %s687_s28 = int_to_ptr.hbm [resolvable:$true] %s686_s28 }
  0x2a   : > { %v330_v7 = vld [vmem:[#allocation6 + $0xe8] sm:$0xff]  ;;  %v360_v9 = vld [vmem:[#allocation6 + $0x1d8] sm:$0xff]  ;;  %v327_v10 = vld [vmem:[#allocation6 + $0xd0] sm:$0xff]  ;;  %s669_s15 = scalar_lea.sflag [#allocation5], %s1217_s10  ;;  %s1019_s29 = sshra.s32 %s687_s28, 4  ;;  %s1020_s29 = int_to_ptr.hbm [resolvable:$true] %s1019_s29 }
  0x2b   : > { %v328_v11 = vld [vmem:[#allocation6 + $0xd8] sm:$0xff]  ;;  %v357_v12 = vld [vmem:[#allocation6 + $0x1c0] sm:$0xff]  ;;  %v358_v13 = vld [vmem:[#allocation6 + $0x1c8] sm:$0xff]  ;;  %s1021_s30 = scalar_lea.hbm %s1020_s29, 64  ;;  %s1025_s8 = scalar_lea.hbm %s1312_s3, 128 }
  0x2c   : > { %476 = vmatpush.xpose.msra.mxu2 %v361_v4  ;;  %499 = vmatpush.xpose.msra.mxu3 %v362_v5  ;;  %v325_v14 = vld [vmem:[#allocation6 + $0xc0] sm:$0xff]  ;;  %v326_v15 = vld [vmem:[#allocation6 + $0xc8] sm:$0xff]  ;;  %v355_v16 = vld [vmem:[#allocation6 + $0x1b0] sm:$0xff]  ;;  %p1022_p1 = scmp.ne.s32.totalorder %s1020_s29, %s1021_s30  ;;  %p1026_p11 = scmp.lt.s32.totalorder %s1020_s29, %s1312_s3 }
  0x2d   : > { %430 = vmatpush.xpose.msra.mxu0 %v329_v6  ;;  %453 = vmatpush.xpose.msra.mxu1 %v330_v7  ;;  %v356_v17 = vld [vmem:[#allocation6 + $0x1b8] sm:$0xff]  ;;  %v323_v18 = vld [vmem:[#allocation6 + $0xb0] sm:$0xff]  ;;  %v353_v20 = vld [vmem:[#allocation6 + $0x1a0] sm:$0xff]  ;;  %p1027_p12 = scmp.lt.s32.totalorder %s1025_s8, %s1021_s30 }
  0x2e   : > { %v324_v19 = vld [vmem:[#allocation6 + $0xb8] sm:$0xff]  ;;  %v354_v21 = vld [vmem:[#allocation6 + $0x1a8] sm:$0xff]  ;;  %v321_v22 = vld [vmem:[#allocation6 + $0xa0] sm:$0xff]  ;;  %p1023_p3 = pnand %p1022_p1, %p1194_p2 }
  0x2f   : > { %v322_v23 = vld [vmem:[#allocation6 + $0xa8] sm:$0xff]  ;;  %v351_v24 = vld [vmem:[#allocation6 + $0x190] sm:$0xff]  ;;  %v352_v25 = vld [vmem:[#allocation6 + $0x198] sm:$0xff]  ;;  %p1028_p13 = por %p1027_p12, %p1026_p11 }
  0x30   : > { %477 = vmatpush.xpose.msra.mxu2 %v359_v8  ;;  %500 = vmatpush.xpose.msra.mxu3 %v360_v9  ;;  %v319_v26 = vld [vmem:[#allocation6 + $0x90] sm:$0xff]  ;;  %v320_v27 = vld [vmem:[#allocation6 + $0x98] sm:$0xff]  ;;  %v349_v28 = vld [vmem:[#allocation6 + $0x180] sm:$0xff]  ;;  %p1024_p7 = pneg %p1023_p3 }
  0x31   : > { %431 = vmatpush.xpose.msra.mxu0 %v327_v10  ;;  %454 = vmatpush.xpose.msra.mxu1 %v328_v11  ;;  %v350_v29 = vld [vmem:[#allocation6 + $0x188] sm:$0xff]  ;;  %v317_v30 = vld [vmem:[#allocation6 + $0x80] sm:$0xff]  ;;  %v347_v32 = vld [vmem:[#allocation6 + $0x170] sm:$0xff] }
  0x32   : > { %v318_v31 = vld [vmem:[#allocation6 + $0x88] sm:$0xff]  ;;  %v348_v33 = vld [vmem:[#allocation6 + $0x178] sm:$0xff]  ;;  %v315_v34 = vld [vmem:[#allocation6 + $0x70] sm:$0xff]  ;;  %p1029_p0 = pnand %p1028_p13, %p1024_p7 }
  0x33   : > { %v316_v35 = vld [vmem:[#allocation6 + $0x78] sm:$0xff]  ;;  %v345_v36 = vld [vmem:[#allocation6 + $0x160] sm:$0xff]  ;;  %v346_v37 = vld [vmem:[#allocation6 + $0x168] sm:$0xff] }
  0x34   : > { %478 = vmatpush.xpose.msra.mxu2 %v357_v12  ;;  %501 = vmatpush.xpose.msra.mxu3 %v358_v13  ;;  %v313_v38 = vld [vmem:[#allocation6 + $0x60] sm:$0xff]  ;;  %v314_v39 = vld [vmem:[#allocation6 + $0x68] sm:$0xff]  ;;  %v343_v40 = vld [vmem:[#allocation6 + $0x150] sm:$0xff] }
  0x35   : > { %432 = vmatpush.xpose.msra.mxu0 %v325_v14  ;;  %455 = vmatpush.xpose.msra.mxu1 %v326_v15  ;;  %v344_v41 = vld [vmem:[#allocation6 + $0x158] sm:$0xff]  ;;  %v311_v42 = vld [vmem:[#allocation6 + $0x50] sm:$0xff]  ;;  %v341_v44 = vld [vmem:[#allocation6 + $0x140] sm:$0xff] }
  0x36   : > { %v312_v43 = vld [vmem:[#allocation6 + $0x58] sm:$0xff]  ;;  %v342_v45 = vld [vmem:[#allocation6 + $0x148] sm:$0xff]  ;;  %v309_v46 = vld [vmem:[#allocation6 + $0x40] sm:$0xff] }
  0x37   : > { %v310_v47 = vld [vmem:[#allocation6 + $0x48] sm:$0xff]  ;;  %v339_v48 = vld [vmem:[#allocation6 + $0x130] sm:$0xff]  ;;  %v340_v49 = vld [vmem:[#allocation6 + $0x138] sm:$0xff] }
  0x38   : > { %479 = vmatpush.xpose.msra.mxu2 %v355_v16  ;;  %502 = vmatpush.xpose.msra.mxu3 %v356_v17  ;;  %v307_v50 = vld [vmem:[#allocation6 + $0x30] sm:$0xff]  ;;  %v308_v51 = vld [vmem:[#allocation6 + $0x38] sm:$0xff]  ;;  %v337_v52 = vld [vmem:[#allocation6 + $0x120] sm:$0xff] }
  0x39   : > { %433 = vmatpush.xpose.msra.mxu0 %v323_v18  ;;  %456 = vmatpush.xpose.msra.mxu1 %v324_v19  ;;  %v338_v53 = vld [vmem:[#allocation6 + $0x128] sm:$0xff]  ;;  %v305_v54 = vld [vmem:[#allocation6 + $0x20] sm:$0xff]  ;;  %v335_v56 = vld [vmem:[#allocation6 + $0x110] sm:$0xff] }
  0x3a   : > { %v306_v55 = vld [vmem:[#allocation6 + $0x28] sm:$0xff]  ;;  %v336_v57 = vld [vmem:[#allocation6 + $0x118] sm:$0xff]  ;;  %v303_v58 = vld [vmem:[#allocation6 + $0x10] sm:$0xff] }
  0x3b   : > { %v304_v59 = vld [vmem:[#allocation6 + $0x18] sm:$0xff]  ;;  %v333_v60 = vld [vmem:[#allocation6 + $0x100] sm:$0xff]  ;;  %v334_v61 = vld [vmem:[#allocation6 + $0x108] sm:$0xff] }
  0x3c   : > { %480 = vmatpush.xpose.msra.mxu2 %v353_v20  ;;  %503 = vmatpush.xpose.msra.mxu3 %v354_v21  ;;  %v427_v62 = vld [vmem:[#allocation6 + $0x3f0] sm:$0xff]  ;;  %v428_v63 = vld [vmem:[#allocation6 + $0x3f8] sm:$0xff]  ;;  %v301_v0 = vld [vmem:[#allocation6] sm:$0xff] }
  0x3d   : > { %434 = vmatpush.xpose.msra.mxu0 %v321_v22  ;;  %457 = vmatpush.xpose.msra.mxu1 %v322_v23  ;;  %v302_v1 = vld [vmem:[#allocation6 + $0x8] sm:$0xff]  ;;  %v395_v2 = vld [vmem:[#allocation6 + $0x2f0] sm:$0xff]  ;;  %v396_v3 = vld [vmem:[#allocation6 + $0x2f8] sm:$0xff] }
  0x3e   : > { %v425_v4 = vld [vmem:[#allocation6 + $0x3e0] sm:$0xff]  ;;  %v426_v5 = vld [vmem:[#allocation6 + $0x3e8] sm:$0xff]  ;;  %v423_v8 = vld [vmem:[#allocation6 + $0x3d0] sm:$0xff] }
  0x3f   : > { %v393_v6 = vld [vmem:[#allocation6 + $0x2e0] sm:$0xff]  ;;  %v394_v7 = vld [vmem:[#allocation6 + $0x2e8] sm:$0xff]  ;;  %v424_v9 = vld [vmem:[#allocation6 + $0x3d8] sm:$0xff] }
  0x40   : > { %481 = vmatpush.xpose.msra.mxu2 %v351_v24  ;;  %504 = vmatpush.xpose.msra.mxu3 %v352_v25  ;;  %v391_v10 = vld [vmem:[#allocation6 + $0x2d0] sm:$0xff]  ;;  %v392_v11 = vld [vmem:[#allocation6 + $0x2d8] sm:$0xff]  ;;  %v421_v12 = vld [vmem:[#allocation6 + $0x3c0] sm:$0xff] }
  0x41   : > { %435 = vmatpush.xpose.msra.mxu0 %v319_v26  ;;  %458 = vmatpush.xpose.msra.mxu1 %v320_v27  ;;  %v422_v13 = vld [vmem:[#allocation6 + $0x3c8] sm:$0xff]  ;;  %v389_v14 = vld [vmem:[#allocation6 + $0x2c0] sm:$0xff]  ;;  %v419_v17 = vld [vmem:[#allocation6 + $0x3b0] sm:$0xff] }
  0x42   : > { %v390_v15 = vld [vmem:[#allocation6 + $0x2c8] sm:$0xff]  ;;  %v1232_v16 = vld [vmem:[%s1221_s18] sm:$0xff]  ;;  %v420_v18 = vld [vmem:[#allocation6 + $0x3b8] sm:$0xff] }
  0x43   : > { %v1236_v19 = vld [vmem:[%s1221_s18 + $0x8] sm:$0xff]  ;;  %v387_v20 = vld [vmem:[#allocation6 + $0x2b0] sm:$0xff]  ;;  %v388_v21 = vld [vmem:[#allocation6 + $0x2b8] sm:$0xff] }
  0x44   : > { %482 = vmatpush.xpose.msra.mxu2 %v349_v28  ;;  %505 = vmatpush.xpose.msra.mxu3 %v350_v29  ;;  %v417_v22 = vld [vmem:[#allocation6 + $0x3a0] sm:$0xff]  ;;  %v418_v23 = vld [vmem:[#allocation6 + $0x3a8] sm:$0xff]  ;;  %v1242_v26 = vld [vmem:[%s1221_s18 + $0x10] sm:$0xff] }
  0x45   : > { %436 = vmatpush.xpose.msra.mxu0 %v317_v30  ;;  %459 = vmatpush.xpose.msra.mxu1 %v318_v31  ;;  %v385_v24 = vld [vmem:[#allocation6 + $0x2a0] sm:$0xff]  ;;  %v386_v25 = vld [vmem:[#allocation6 + $0x2a8] sm:$0xff]  ;;  %v415_v27 = vld [vmem:[#allocation6 + $0x390] sm:$0xff] }
  0x46   : > { %v416_v28 = vld [vmem:[#allocation6 + $0x398] sm:$0xff]  ;;  %v383_v30 = vld [vmem:[#allocation6 + $0x290] sm:$0xff] }
  0x47   : > { %v1246_v29 = vld [vmem:[%s1221_s18 + $0x18] sm:$0xff] }
  0x48   : > { %483 = vmatpush.xpose.msra.mxu2 %v347_v32  ;;  %506 = vmatpush.xpose.msra.mxu3 %v348_v33  ;;  %v384_v31 = vld [vmem:[#allocation6 + $0x298] sm:$0xff]  ;;  %v413_v32 = vld [vmem:[#allocation6 + $0x380] sm:$0xff]  ;;  %v414_v33 = vld [vmem:[#allocation6 + $0x388] sm:$0xff] }
  0x49   : > { %437 = vmatpush.xpose.msra.mxu0 %v315_v34  ;;  %460 = vmatpush.xpose.msra.mxu1 %v316_v35  ;;  %v381_v34 = vld [vmem:[#allocation6 + $0x280] sm:$0xff]  ;;  %v382_v35 = vld [vmem:[#allocation6 + $0x288] sm:$0xff] }
  0x4c   : > { %484 = vmatpush.xpose.msra.mxu2 %v345_v36  ;;  %507 = vmatpush.xpose.msra.mxu3 %v346_v37  ;;  %v411_v36 = vld [vmem:[#allocation6 + $0x370] sm:$0xff]  ;;  %v412_v37 = vld [vmem:[#allocation6 + $0x378] sm:$0xff] }
  0x4d   : > { %438 = vmatpush.xpose.msra.mxu0 %v313_v38  ;;  %461 = vmatpush.xpose.msra.mxu1 %v314_v39  ;;  %v379_v38 = vld [vmem:[#allocation6 + $0x270] sm:$0xff]  ;;  %v380_v39 = vld [vmem:[#allocation6 + $0x278] sm:$0xff] }
  0x50   : > { %485 = vmatpush.xpose.msra.mxu2 %v343_v40  ;;  %508 = vmatpush.xpose.msra.mxu3 %v344_v41  ;;  %v409_v40 = vld [vmem:[#allocation6 + $0x360] sm:$0xff]  ;;  %v410_v41 = vld [vmem:[#allocation6 + $0x368] sm:$0xff] }
  0x51   : > { %439 = vmatpush.xpose.msra.mxu0 %v311_v42  ;;  %462 = vmatpush.xpose.msra.mxu1 %v312_v43  ;;  %v377_v42 = vld [vmem:[#allocation6 + $0x260] sm:$0xff]  ;;  %v378_v43 = vld [vmem:[#allocation6 + $0x268] sm:$0xff] }
  0x54   : > { %486 = vmatpush.xpose.msra.mxu2 %v341_v44  ;;  %509 = vmatpush.xpose.msra.mxu3 %v342_v45  ;;  %v407_v44 = vld [vmem:[#allocation6 + $0x350] sm:$0xff]  ;;  %v408_v45 = vld [vmem:[#allocation6 + $0x358] sm:$0xff] }
  0x55   : > { %440 = vmatpush.xpose.msra.mxu0 %v309_v46  ;;  %463 = vmatpush.xpose.msra.mxu1 %v310_v47  ;;  %v375_v46 = vld [vmem:[#allocation6 + $0x250] sm:$0xff]  ;;  %v376_v47 = vld [vmem:[#allocation6 + $0x258] sm:$0xff] }
  0x58   : > { %487 = vmatpush.xpose.msra.mxu2 %v339_v48  ;;  %510 = vmatpush.xpose.msra.mxu3 %v340_v49  ;;  %v405_v48 = vld [vmem:[#allocation6 + $0x340] sm:$0xff]  ;;  %v406_v49 = vld [vmem:[#allocation6 + $0x348] sm:$0xff] }
  0x59   : > { %441 = vmatpush.xpose.msra.mxu0 %v307_v50  ;;  %464 = vmatpush.xpose.msra.mxu1 %v308_v51  ;;  %v373_v50 = vld [vmem:[#allocation6 + $0x240] sm:$0xff]  ;;  %v374_v51 = vld [vmem:[#allocation6 + $0x248] sm:$0xff] }
  0x5c   : > { %488 = vmatpush.xpose.msra.mxu2 %v337_v52  ;;  %511 = vmatpush.xpose.msra.mxu3 %v338_v53  ;;  %v403_v52 = vld [vmem:[#allocation6 + $0x330] sm:$0xff]  ;;  %v404_v53 = vld [vmem:[#allocation6 + $0x338] sm:$0xff] }
  0x5d   : > { %442 = vmatpush.xpose.msra.mxu0 %v305_v54  ;;  %465 = vmatpush.xpose.msra.mxu1 %v306_v55  ;;  %v371_v54 = vld [vmem:[#allocation6 + $0x230] sm:$0xff]  ;;  %v372_v55 = vld [vmem:[#allocation6 + $0x238] sm:$0xff] }
  0x60   : > { %489 = vmatpush.xpose.msra.mxu2 %v335_v56  ;;  %512 = vmatpush.xpose.msra.mxu3 %v336_v57  ;;  %v401_v56 = vld [vmem:[#allocation6 + $0x320] sm:$0xff]  ;;  %v402_v57 = vld [vmem:[#allocation6 + $0x328] sm:$0xff] }
  0x61   : > { %443 = vmatpush.xpose.msra.mxu0 %v303_v58  ;;  %466 = vmatpush.xpose.msra.mxu1 %v304_v59  ;;  %v369_v58 = vld [vmem:[#allocation6 + $0x220] sm:$0xff]  ;;  %v370_v59 = vld [vmem:[#allocation6 + $0x228] sm:$0xff] }
  0x64   : > { %490 = vmatpush.xpose.msra.mxu2 %v333_v60  ;;  %513 = vmatpush.xpose.msra.mxu3 %v334_v61  ;;  %v399_v60 = vld [vmem:[#allocation6 + $0x310] sm:$0xff]  ;;  %v400_v61 = vld [vmem:[#allocation6 + $0x318] sm:$0xff] }
  0x65   : > { %444 = vmatpush.xpose.msra.mxu0 %v301_v0  ;;  %467 = vmatpush.xpose.msra.mxu1 %v302_v1  ;;  %v397_v0 = vld [vmem:[#allocation6 + $0x300] sm:$0xff]  ;;  %v398_v1 = vld [vmem:[#allocation6 + $0x308] sm:$0xff] }
  0x67   : > { %491 = vmatmul.f32.vlgmr.msra.gmra.mxu2 %v1232_v16  ;;  %514 = vmatmul.f32.vlgmr.msra.gmra.mxu3 %v1236_v19 }
  0x68   : > { %567 = vmatpush.xpose.msrb.mxu2 %v427_v62  ;;  %590 = vmatpush.xpose.msrb.mxu3 %v428_v63  ;;  %v367_v62 = vld [vmem:[#allocation6 + $0x210] sm:$0xff]  ;;  %v368_v63 = vld [vmem:[#allocation6 + $0x218] sm:$0xff] }
  0x69   : > { %521 = vmatpush.xpose.msrb.mxu0 %v395_v2  ;;  %544 = vmatpush.xpose.msrb.mxu1 %v396_v3  ;;  %v365_v2 = vld [vmem:[#allocation6 + $0x200] sm:$0xff]  ;;  %v366_v3 = vld [vmem:[#allocation6 + $0x208] sm:$0xff] }
  0x6a   : > { %445 = vmatmul.f32.vlgmr.msra.gmra.mxu0 %v1232_v16  ;;  %468 = vmatmul.f32.vlgmr.msra.gmra.mxu1 %v1236_v19 }
  0x6c   : > { %568 = vmatpush.xpose.msrb.mxu2 %v425_v4  ;;  %591 = vmatpush.xpose.msrb.mxu3 %v426_v5  ;;  %v279_v4 = vld [vmem:[#allocation8] sm:$0xf] }
  0x6d   : > { %522 = vmatpush.xpose.msrb.mxu0 %v393_v6  ;;  %545 = vmatpush.xpose.msrb.mxu1 %v394_v7  ;;  %v281_v6 = vperm.slane %v279_v4, 0 }
  0x6f   : > { %494 = vmatmul.f32.gmra.mxu2 %v1242_v26  ;;  %517 = vmatmul.f32.gmra.mxu3 %v1246_v29 }
  0x70   : > { %569 = vmatpush.xpose.msrb.mxu2 %v423_v8  ;;  %592 = vmatpush.xpose.msrb.mxu3 %v424_v9 }
  0x71   : > { %523 = vmatpush.xpose.msrb.mxu0 %v391_v10  ;;  %546 = vmatpush.xpose.msrb.mxu1 %v392_v11  ;;  %v282_v11 = vperm.slane %v279_v4, 1 }
  0x72   : > { %448 = vmatmul.f32.gmra.mxu0 %v1242_v26  ;;  %471 = vmatmul.f32.gmra.mxu1 %v1246_v29 }
  0x74   : > { %570 = vmatpush.xpose.msrb.mxu2 %v421_v12  ;;  %593 = vmatpush.xpose.msrb.mxu3 %v422_v13 }
  0x75   : > { %524 = vmatpush.xpose.msrb.mxu0 %v389_v14  ;;  %547 = vmatpush.xpose.msrb.mxu1 %v390_v15 }
  0x78   : > { %571 = vmatpush.xpose.msrb.mxu2 %v419_v17  ;;  %594 = vmatpush.xpose.msrb.mxu3 %v420_v18 }
  0x79   : > { %525 = vmatpush.xpose.msrb.mxu0 %v387_v20  ;;  %548 = vmatpush.xpose.msrb.mxu1 %v388_v21 }
  0x7c   : > { %572 = vmatpush.xpose.msrb.mxu2 %v417_v22  ;;  %595 = vmatpush.xpose.msrb.mxu3 %v418_v23  ;;  %v283_v23 = vperm.slane %v279_v4, 2 }
  0x7d   : > { %526 = vmatpush.xpose.msrb.mxu0 %v385_v24  ;;  %549 = vmatpush.xpose.msrb.mxu1 %v386_v25 }
  0x80   : > { %573 = vmatpush.xpose.msrb.mxu2 %v415_v27  ;;  %596 = vmatpush.xpose.msrb.mxu3 %v416_v28  ;;  %v284_v28 = vperm.slane %v279_v4, 3 }
  0x81   : > { %527 = vmatpush.xpose.msrb.mxu0 %v383_v30  ;;  %550 = vmatpush.xpose.msrb.mxu1 %v384_v31 }
  0x84   : > { %574 = vmatpush.xpose.msrb.mxu2 %v413_v32  ;;  %597 = vmatpush.xpose.msrb.mxu3 %v414_v33 }
  0x85   : > { %528 = vmatpush.xpose.msrb.mxu0 %v381_v34  ;;  %551 = vmatpush.xpose.msrb.mxu1 %v382_v35 }
  0x88   : > { %575 = vmatpush.xpose.msrb.mxu2 %v411_v36  ;;  %598 = vmatpush.xpose.msrb.mxu3 %v412_v37 }
  0x89   : > { %529 = vmatpush.xpose.msrb.mxu0 %v379_v38  ;;  %552 = vmatpush.xpose.msrb.mxu1 %v380_v39 }
  0x8c   : > { %576 = vmatpush.xpose.msrb.mxu2 %v409_v40  ;;  %599 = vmatpush.xpose.msrb.mxu3 %v410_v41 }
  0x8d   : > { %530 = vmatpush.xpose.msrb.mxu0 %v377_v42  ;;  %553 = vmatpush.xpose.msrb.mxu1 %v378_v43 }
  0x90   : > { %577 = vmatpush.xpose.msrb.mxu2 %v407_v44  ;;  %600 = vmatpush.xpose.msrb.mxu3 %v408_v45 }
  0x91   : > { %531 = vmatpush.xpose.msrb.mxu0 %v375_v46  ;;  %554 = vmatpush.xpose.msrb.mxu1 %v376_v47 }
  0x94   : > { %578 = vmatpush.xpose.msrb.mxu2 %v405_v48  ;;  %601 = vmatpush.xpose.msrb.mxu3 %v406_v49 }
  0x95   : > { %532 = vmatpush.xpose.msrb.mxu0 %v373_v50  ;;  %555 = vmatpush.xpose.msrb.mxu1 %v374_v51 }
  0x98   : > { %579 = vmatpush.xpose.msrb.mxu2 %v403_v52  ;;  %602 = vmatpush.xpose.msrb.mxu3 %v404_v53 }
  0x99   : > { %533 = vmatpush.xpose.msrb.mxu0 %v371_v54  ;;  %556 = vmatpush.xpose.msrb.mxu1 %v372_v55 }
  0x9c   : > { %580 = vmatpush.xpose.msrb.mxu2 %v401_v56  ;;  %603 = vmatpush.xpose.msrb.mxu3 %v402_v57 }
  0x9d   : > { %534 = vmatpush.xpose.msrb.mxu0 %v369_v58  ;;  %557 = vmatpush.xpose.msrb.mxu1 %v370_v59 }
  0xa0   : > { %581 = vmatpush.xpose.msrb.mxu2 %v399_v60  ;;  %604 = vmatpush.xpose.msrb.mxu3 %v400_v61 }
  0xa1   : > { %535 = vmatpush.xpose.msrb.mxu0 %v367_v62  ;;  %558 = vmatpush.xpose.msrb.mxu1 %v368_v63 }
  0xa4   : > { %582 = vmatpush.xpose.msrb.mxu2 %v397_v0  ;;  %605 = vmatpush.xpose.msrb.mxu3 %v398_v1 }
  0xa5   : > { %536 = vmatpush.xpose.msrb.mxu0 %v365_v2  ;;  %559 = vmatpush.xpose.msrb.mxu1 %v366_v3 }
  0xa7   : > { %583 = vmatmul.f32.vlgmr.msrb.gmra.mxu2 %v1232_v16  ;;  %606 = vmatmul.f32.vlgmr.msrb.gmra.mxu3 %v1236_v19 }
  0xa8   : > { %537 = vmatmul.f32.vlgmr.msrb.gmra.mxu0 %v1232_v16  ;;  %560 = vmatmul.f32.vlgmr.msrb.gmra.mxu1 %v1236_v19 }
  0xaf   : > { %586 = vmatmul.f32.gmra.mxu2 %v1242_v26  ;;  %609 = vmatmul.f32.gmra.mxu3 %v1246_v29 }
  0xb0   : > { %540 = vmatmul.f32.gmra.mxu0 %v1242_v26  ;;  %563 = vmatmul.f32.gmra.mxu1 %v1246_v29 }
  0xe7   : > { %v446_v5 = vpop.f32.mrf.mxu0  ;;  %v469_v7 = vpop.f32.mrf.mxu1 }
  0xe8   : > { %v470_v8 = vadd.f32 %v469_v7, %v446_v5 }
  0xea   : > { %v652_v9 = vadd.f32 %v470_v8, %v281_v6  ;;  %v492_v10 = vpop.f32.mrf.mxu2  ;;  %v515_v12 = vpop.f32.mrf.mxu3 }
  0xeb   : > { %v516_v14 = vadd.f32 %v515_v12, %v492_v10 }
  0xec   : > { %660 = vst [vmem:[%s1260_s21] sm:$0xff] %v652_v9 }
  0xed   : > { %v653_v16 = vadd.f32 %v516_v14, %v282_v11 }
  0xef   : > { %v449_v13 = vpop.f32.mrf.mxu0  ;;  %v472_v15 = vpop.f32.mrf.mxu1  ;;  %661 = vst [vmem:[%s1260_s21 + $0x8] sm:$0xff] %v653_v16 }
  0xf0   : > { %v473_v17 = vadd.f32 %v472_v15, %v449_v13 }
  0xf2   : > { %v656_v18 = vadd.f32 %v473_v17, %v281_v6  ;;  %v495_v19 = vpop.f32.mrf.mxu2  ;;  %v518_v20 = vpop.f32.mrf.mxu3 }
  0xf3   : > { %v519_v21 = vadd.f32 %v518_v20, %v495_v19 }
  0xf4   : > { %664 = vst [vmem:[%s1260_s21 + $0x20] sm:$0xff] %v656_v18 }
  0xf5   : > { %v657_v22 = vadd.f32 %v519_v21, %v282_v11 }
  0xf7   : > { %665 = vst [vmem:[%s1260_s21 + $0x28] sm:$0xff] %v657_v22 }
 0x125   : > { %v538_v24 = vpop.f32.mrf.mxu0  ;;  %v561_v25 = vpop.f32.mrf.mxu1 }
 0x126   : > { %v562_v26 = vadd.f32 %v561_v25, %v538_v24 }
 0x128   : > { %v654_v27 = vadd.f32 %v562_v26, %v283_v23 }
 0x12a   : > { %v584_v29 = vpop.f32.mrf.mxu2  ;;  %v607_v30 = vpop.f32.mrf.mxu3  ;;  %662 = vst [vmem:[%s1260_s21 + $0x10] sm:$0xff] %v654_v27 }
 0x12b   : > { %v608_v31 = vadd.f32 %v607_v30, %v584_v29 }
 0x12d   : > { %v655_v32 = vadd.f32 %v608_v31, %v284_v28  ;;  %v541_v33 = vpop.f32.mrf.mxu0  ;;  %v564_v34 = vpop.f32.mrf.mxu1 }
 0x12e   : > { %v565_v35 = vadd.f32 %v564_v34, %v541_v33 }
 0x12f   : > { %663 = vst [vmem:[%s1260_s21 + $0x18] sm:$0xff] %v655_v32 }
 0x130   : > { %v658_v36 = vadd.f32 %v565_v35, %v283_v23 }
 0x132   : > { %v587_v37 = vpop.f32.mrf.mxu2  ;;  %v610_v38 = vpop.f32.mrf.mxu3  ;;  %666 = vst [vmem:[%s1260_s21 + $0x30] sm:$0xff] %v658_v36 }
 0x133   : > { %v611_v39 = vadd.f32 %v610_v38, %v587_v37 }
 0x135   : > { %v659_v40 = vadd.f32 %v611_v39, %v284_v28 }
 0x137   : > { %667 = vst [vmem:[%s1260_s21 + $0x38] sm:$0xff] %v659_v40 }
 0x138   : > { %1032 = shalt.err (!%p1029_p0)
}
 0x139   : > { %s1097_s10 = smov 512   ;;  %s1098_s18 = smov 32  }
 0x13a   : > { %838 = dma.vmem_to_hbm [thread:$0]  (%p1194_p2), %s685_s27, 1024, %s687_s28, %s669_s15, %s1097_s10, %s1097_s10, %s1098_s18  }
 0x13b PF: > { %s701_s20 = sand.u32 1, %s1071_s12   ;;  %p852_p4 = pnand %p808_p10, %p1164_p5 }
 0x13c   : > { %s702_s21 = scalar_lea.sflag [#allocation5], %s701_s20 }
 0x13d   : > { %p853_p6 = pneg %p852_p4 }
 0x13f   : > { %1066 = dma.done.wait (%p853_p6), %s702_s21, 1024  }
 0x140   : > { %1068 = vsyncadd (%p853_p6), %s702_s21, 4294966272  ;;  %s20_s17 = sadd.s32 1, %s1091_s17   ;;  %s1318_s12 = smov %s1075_s13 }
 0x141   : > { %p17_p8 = scmp.ge.s32.totalorder %s20_s17, 4   ;;  %s1319_s13 = smov %s1079_s14 }
 0x142   : > { %s1320_s14 = smov %s1204_s25  ;;  %s1321_s15 = smov %s1087_s16 }
 0x143   : > { %s1322_s16 = smov %s1324_s9  ;;  %19 = sbr.rel (!%p17_p8) target bundleno = 7 (0x7), region = 99 }
 0x148   :  { %708 = vsyncpa [#allocation4], 1 }
 0x149   :  { %710 = vsyncpa [#allocation4 + $0x1], 1 }
 0x14a   :  { %711 = vsyncpa [#allocation7], 1 }
 0x14b   :  { %712 = vsyncpa [#allocation5], 1 }
 0x14c   :  { %714 = vsyncpa [#allocation5 + $0x1], 1 }

</bundles_post_ra>
